<compile_context>
chip_gen: v6e
topology: v6e:2x2x1
jax: 0.10.0
libtpu: 0.0.40
codegen_flags: <defaults>
</compile_context>

<pallas_src>
import functools

import jax
import jax.numpy as jnp
from jax.experimental import pallas as pl
from jax.experimental.pallas import tpu as pltpu

# ---------------- configuration (small, consistent with the module) ----------
NODES_PER_GRAPH = 6
NUM_GRAPHS = 4                                     # graphs per batch
NUM_NODES = NODES_PER_GRAPH * NUM_GRAPHS           # 24 nodes per batch
DIMS_CONV = [16, 32, 32]                           # two BnGraphConvLayer blocks
DIMS_LIN = [32, 64, 10]                            # one hidden BnLinear + final
NUM_CLASSES = DIMS_LIN[-1]

N_CONV = len(DIMS_CONV) - 1                        # 2
N_LIN = len(DIMS_LIN) - 2                          # 1
N_LAYERS = N_CONV + N_LIN + 1                      # 4

BATCHES = 2                                        # independent graph-batches (grid)
N_PAD = 32                                         # node rows
G_PAD = 8                                          # graph rows / bias-slab rows
K_PAD = 64                                         # contraction (input-feature) lanes
F_PAD = 128                                        # per-layer output lanes (lane-dense)
EPS = 1e-5                                         # BatchNorm1d eps
NEG_INF = -1e30                                    # class mask folded into final bias


# ---------------------------- fused Pallas kernel -----------------------------
def fused_forward_kernel(a_ref, p_ref, x_ref, w_ref, b_ref, o_ref, *,
                         n_conv, n_lin):
    """One graph-batch per grid step; everything stays resident in VMEM.

    a_ref : (N_PAD, N_PAD)            bf16  D^-1/2 (A+I) D^-1/2
    p_ref : (G_PAD, N_PAD)            f32   mean-pool matrix (1/|graph| entries)
    x_ref : (N_PAD, K_PAD)            bf16  node features
    w_ref : (N_LAYERS, K_PAD, F_PAD)  bf16  BN-folded weights, packed slab
    b_ref : (G_PAD, F_PAD)            f32   BN-folded biases, one row per layer;
                                            final row also carries the -1e30 mask
    o_ref : (G_PAD, F_PAD)            f32   log-softmax output
    """
    a = a_ref[...]                                 # (N_PAD, N_PAD) bf16
    h = x_ref[...]                                 # (N_PAD, K_PAD) bf16
    biases = b_ref[...]                            # (G_PAD, F_PAD) f32
    li = 0

    # Conv encoder: tanh(A_norm @ (X @ W') + b')   (BN folded into W', b')
    for _ in range(n_conv):
        xw = jnp.dot(h, w_ref[li], preferred_element_type=jnp.float32)
        hf = jnp.dot(a, xw.astype(jnp.bfloat16),
                     preferred_element_type=jnp.float32) + biases[li:li + 1, :]
        # padded output lanes stay exactly 0 (zero W columns, zero bias),
        # so slicing back to K_PAD lanes loses nothing.
        h = jnp.tanh(hf)[:, :K_PAD].astype(jnp.bfloat16)
        li += 1

    # global_mean_pool as a dense matmul: P[g, n] = 1/|graph g| for its nodes
    g = jnp.dot(p_ref[...].astype(jnp.bfloat16), h,
                preferred_element_type=jnp.float32).astype(jnp.bfloat16)

    # hidden BnLinear layers + tanh
    # TODO(synk): F.dropout(p=0.3) is identity in eval mode; training-mode
    # stochastic dropout is not implemented here.
    for _ in range(n_lin):
        gf = jnp.tanh(jnp.dot(g, w_ref[li], preferred_element_type=jnp.float32)
                      + biases[li:li + 1, :])
        g = gf[:, :K_PAD].astype(jnp.bfloat16)
        li += 1

    # final BnLinear + log_softmax over the class (lane) axis.
    # Padded class lanes carry -1e30 via the folded bias row -> exp underflows to 0.
    logits = (jnp.dot(g, w_ref[li], preferred_element_type=jnp.float32)
              + biases[li:li + 1, :])
    m = jnp.max(logits, axis=1, keepdims=True)
    lse = jnp.log(jnp.sum(jnp.exp(logits - m), axis=1, keepdims=True))
    o_ref[...] = logits - m - lse


def forward(a_all, p_all, x_all, w_packed, b_packed):
    """a_all (B,32,32) bf16, p_all (B,8,32) f32, x_all (B,32,64) bf16,
    w_packed (4,64,128) bf16, b_packed (8,128) f32  ->  (B, NUM_GRAPHS, NUM_CLASSES)."""
    B = a_all.shape[0]

    flops_per_batch = (
        2 * N_PAD * K_PAD * F_PAD * N_CONV           # X @ W'
        + 2 * N_PAD * N_PAD * F_PAD * N_CONV         # A_norm @ (XW)
        + 2 * G_PAD * N_PAD * K_PAD                  # mean pool
        + 2 * G_PAD * K_PAD * F_PAD * (N_LIN + 1))   # hidden + final linears
    transc_per_batch = (N_CONV * N_PAD * F_PAD       # tanh on conv outputs
                        + N_LIN * G_PAD * F_PAD      # tanh on hidden outputs
                        + 2 * G_PAD * F_PAD)         # exp + log in log_softmax
    bytes_accessed = (a_all.size * a_all.dtype.itemsize
                      + p_all.size * p_all.dtype.itemsize
                      + x_all.size * x_all.dtype.itemsize
                      + w_packed.size * w_packed.dtype.itemsize
                      + b_packed.size * b_packed.dtype.itemsize
                      + B * G_PAD * F_PAD * 4)
    cost = pl.CostEstimate(flops=B * flops_per_batch,
                           transcendentals=B * transc_per_batch,
                           bytes_accessed=bytes_accessed)

    kernel = functools.partial(fused_forward_kernel, n_conv=N_CONV, n_lin=N_LIN)
    out = pl.pallas_call(
        kernel,
        out_shape=jax.ShapeDtypeStruct((B, G_PAD, F_PAD), jnp.float32),
        grid_spec=pltpu.PrefetchScalarGridSpec(
            num_scalar_prefetch=0,
            grid=(B,),
            in_specs=[
                pl.BlockSpec((None, N_PAD, N_PAD), lambda b: (b, 0, 0)),   # A
                pl.BlockSpec((None, G_PAD, N_PAD), lambda b: (b, 0, 0)),   # P
                pl.BlockSpec((None, N_PAD, K_PAD), lambda b: (b, 0, 0)),   # X
                pl.BlockSpec((N_LAYERS, K_PAD, F_PAD), lambda b: (0, 0, 0)),  # W slab
                pl.BlockSpec((G_PAD, F_PAD), lambda b: (0, 0)),            # b slab
            ],
            out_specs=pl.BlockSpec((None, G_PAD, F_PAD), lambda b: (b, 0, 0)),
        ),
        compiler_params=pltpu.CompilerParams(
            dimension_semantics=("parallel",)),   # v7x: shard batches over 2 TCs
        cost_estimate=cost,
    )(a_all, p_all, x_all, w_packed, b_packed)
    return out[:, :NUM_GRAPHS, :NUM_CLASSES]


# ------------------------------- glue / setup --------------------------------
def pad2(a, rows, cols, dtype=jnp.float32):
    out = jnp.zeros((rows, cols), dtype)
    return out.at[: a.shape[0], : a.shape[1]].set(a.astype(dtype))


def init_layer(key, din, dout):
    kw, kb, k1, k2, k3, k4 = jax.random.split(key, 6)
    w = jax.random.normal(kw, (din, dout)) / jnp.sqrt(float(din))
    b = jax.random.normal(kb, (dout,)) * 0.1
    gamma = jax.random.uniform(k1, (dout,), minval=0.5, maxval=1.5)
    beta = jax.random.normal(k2, (dout,)) * 0.1
    mean = jax.random.normal(k3, (dout,)) * 0.1
    var = jax.random.uniform(k4, (dout,), minval=0.5, maxval=1.5)
    return w, b, gamma, beta, mean, var


def fold_bn(w, b, gamma, beta, mean, var):
    """Fold eval-mode BatchNorm1d into the preceding linear map (f32, unpadded)."""
    scale = gamma * jax.lax.rsqrt(var + EPS)
    return w * scale[None, :], (b - mean) * scale + beta


def pack_params(folded):
    """Pack BN-folded (W, b) per layer into one weight slab + one bias slab."""
    w_packed = jnp.zeros((N_LAYERS, K_PAD, F_PAD), jnp.bfloat16)
    b_packed = jnp.zeros((G_PAD, F_PAD), jnp.float32)
    for i, (w, b) in enumerate(folded):
        w_packed = w_packed.at[i, : w.shape[0], : w.shape[1]].set(
            w.astype(jnp.bfloat16))
        b_packed = b_packed.at[i, : b.shape[0]].set(b.astype(jnp.float32))
    # fold the log_softmax class mask into the final layer's bias row
    b_packed = b_packed.at[N_LAYERS - 1, NUM_CLASSES:].set(NEG_INF)
    return w_packed, b_packed


def build_graph():
    """Four 6-node ring graphs (undirected, both edge directions stored)."""
    src, dst = [], []
    for g in range(NUM_GRAPHS):
        base = g * NODES_PER_GRAPH
        for i in range(NODES_PER_GRAPH):
            a = base + i
            b = base + (i + 1) % NODES_PER_GRAPH
            src += [a, b]
            dst += [b, a]
    edge_index = jnp.array([src, dst], dtype=jnp.int32)
    batch = jnp.repeat(jnp.arange(NUM_GRAPHS, dtype=jnp.int32),
                       NODES_PER_GRAPH)
    return edge_index, batch


def gcn_norm_adjacency(edge_index, num_nodes):
    """A_norm = D^{-1/2} (A + I) D^{-1/2}, as in torch_geometric GCNConv."""
    A = jnp.zeros((num_nodes, num_nodes), jnp.float32)
    A = A.at[edge_index[1], edge_index[0]].set(1.0)
    A = A + jnp.eye(num_nodes, dtype=jnp.float32)
    deg = A.sum(axis=1)
    dinv = jax.lax.rsqrt(deg)
    return dinv[:, None] * A * dinv[None, :]


def mean_pool_matrix(batch, num_graphs):
    onehot = (batch[None, :] == jnp.arange(num_graphs)[:, None]).astype(
        jnp.float32)                                     # (G, N)
    counts = onehot.sum(axis=1, keepdims=True)
    return onehot / counts


def reference_forward(x, a_norm, p_pool, folded):
    """Pure-JAX f32 reference of the eval-mode forward pass (BN folded)."""
    h = x
    for i in range(N_CONV):
        w, b = folded[i]
        h = jnp.tanh(a_norm @ (h @ w) + b)
    g = p_pool @ h
    for i in range(N_CONV, N_CONV + N_LIN):
        w, b = folded[i]
        g = jnp.tanh(g @ w + b)
    w, b = folded[-1]
    return jax.nn.log_softmax(g @ w + b, axis=-1)


# --------------------------------- main ---------------------------------------
if __name__ == "__main__":
    # padding-config invariants (output lanes sliced back to K_PAD between layers)
    assert max(DIMS_CONV[:-1] + DIMS_LIN[:-1]) <= K_PAD
    assert max(DIMS_CONV[1:] + DIMS_LIN[1:-1]) <= K_PAD
    assert max(DIMS_CONV[1:] + DIMS_LIN[1:]) <= F_PAD
    assert N_LAYERS <= G_PAD

    key = jax.random.PRNGKey(0)
    k_x, k_conv, k_lin, k_fin = jax.random.split(key, 4)

    # graph data (same ring topology per batch, different node features)
    edge_index, batch = build_graph()
    a_norm = gcn_norm_adjacency(edge_index, NUM_NODES)          # (24, 24) f32
    p_pool = mean_pool_matrix(batch, NUM_GRAPHS)                # (4, 24)  f32
    x = jax.random.normal(k_x, (BATCHES, NUM_NODES, DIMS_CONV[0]),
                          dtype=jnp.float32)

    a_pad = pad2(a_norm, N_PAD, N_PAD, jnp.bfloat16)            # (32, 32) bf16
    p_pad = pad2(p_pool, G_PAD, N_PAD, jnp.float32)             # (8, 32)  f32
    a_all = jnp.stack([a_pad] * BATCHES)                        # (B, 32, 32)
    p_all = jnp.stack([p_pad] * BATCHES)                        # (B, 8, 32)
    x_all = jnp.stack([pad2(x[b], N_PAD, K_PAD, jnp.bfloat16)
                       for b in range(BATCHES)])                # (B, 32, 64)

    # parameters: eval-mode BN folded into (W', b'), then packed into 2 slabs
    folded = []
    conv_keys = jax.random.split(k_conv, N_CONV)
    for i in range(N_CONV):
        folded.append(fold_bn(*init_layer(conv_keys[i],
                                          DIMS_CONV[i], DIMS_CONV[i + 1])))
    lin_keys = jax.random.split(k_lin, max(N_LIN, 1))
    for i in range(1, len(DIMS_LIN) - 1):
        folded.append(fold_bn(*init_layer(lin_keys[i - 1],
                                          DIMS_LIN[i - 1], DIMS_LIN[i])))
    folded.append(fold_bn(*init_layer(k_fin, DIMS_LIN[-2], DIMS_LIN[-1])))
    w_packed, b_packed = pack_params(folded)                    # (4,64,128) / (8,128)

    out = forward(a_all, p_all, x_all, w_packed, b_packed)
    out = jax.block_until_ready(out)

    # sanity checks: shape, finiteness, softmax rows sum to 1, matches f32 reference
    assert out.shape == (BATCHES, NUM_GRAPHS, NUM_CLASSES)
    assert bool(jnp.all(jnp.isfinite(out)))
    row_sums = jnp.exp(out).sum(axis=-1)
    assert bool(jnp.allclose(row_sums, 1.0, atol=1e-4))

    ref = jnp.stack([reference_forward(x[b], a_norm, p_pool, folded)
                     for b in range(BATCHES)])
    assert bool(jnp.max(jnp.abs(out - ref)) < 0.3)              # bf16-at-MXU tolerance

    print("KERNEL_OK")
</pallas_src>

<mosaic_0001>
module attributes {stable_mosaic.version = 11 : i64} {
  func.func @fused_forward_kernel(%arg0: i32, %arg1: memref<1x32x32xbf16, #tpu.memory_space<vmem>>, %arg2: memref<1x8x32xf32, #tpu.memory_space<vmem>>, %arg3: memref<1x32x64xbf16, #tpu.memory_space<vmem>>, %arg4: memref<4x64x128xbf16, #tpu.memory_space<vmem>>, %arg5: memref<8x128xf32, #tpu.memory_space<vmem>>, %arg6: memref<1x8x128xf32, #tpu.memory_space<vmem>>) attributes {dimension_semantics = [#tpu.dimension_semantics<parallel>], iteration_bounds = array<i64: 2>, scalar_prefetch = 0 : i64, scratch_operands = 0 : i64, tpu.core_type = #tpu.core_type<tc>, window_params = [{transform_indices = @transform_0, window_bounds = array<i64: 1, 32, 32>}, {transform_indices = @transform_1, window_bounds = array<i64: 1, 8, 32>}, {transform_indices = @transform_2, window_bounds = array<i64: 1, 32, 64>}, {pipeline_mode = #tpu.pipeline_mode<synchronous>, transform_indices = @transform_3, window_bounds = array<i64: 4, 64, 128>}, {pipeline_mode = #tpu.pipeline_mode<synchronous>, transform_indices = @transform_4, window_bounds = array<i64: 8, 128>}, {transform_indices = @transform_5, window_bounds = array<i64: 1, 8, 128>}]} {
    %c0 = arith.constant 0 : index
    %c0_0 = arith.constant 0 : index
    %c0_1 = arith.constant 0 : index
    %0 = vector.load %arg1[%c0, %c0_0, %c0_1] : memref<1x32x32xbf16, #tpu.memory_space<vmem>>, vector<1x32x32xbf16>
    %1 = vector.shape_cast %0 : vector<1x32x32xbf16> to vector<32x32xbf16>
    %c0_2 = arith.constant 0 : index
    %c0_3 = arith.constant 0 : index
    %c0_4 = arith.constant 0 : index
    %2 = vector.load %arg3[%c0_2, %c0_3, %c0_4] : memref<1x32x64xbf16, #tpu.memory_space<vmem>>, vector<1x32x64xbf16>
    %3 = vector.shape_cast %2 : vector<1x32x64xbf16> to vector<32x64xbf16>
    %c0_5 = arith.constant 0 : index
    %c0_6 = arith.constant 0 : index
    %4 = vector.load %arg5[%c0_5, %c0_6] : memref<8x128xf32, #tpu.memory_space<vmem>>, vector<8x128xf32>
    %c0_7 = arith.constant 0 : index
    %c0_8 = arith.constant 0 : index
    %c0_9 = arith.constant 0 : index
    %5 = vector.load %arg4[%c0_7, %c0_8, %c0_9] : memref<4x64x128xbf16, #tpu.memory_space<vmem>>, vector<1x64x128xbf16>
    %6 = vector.shape_cast %5 : vector<1x64x128xbf16> to vector<64x128xbf16>
    %cst = arith.constant dense<0.000000e+00> : vector<32x128xf32>
    %7 = tpu.matmul %3, %6, %cst {dimension_numbers = #tpu.dot_dimension_numbers<[1], [0], [0], [1], [0, 0, 1, 1], [], []>} : vector<32x64xbf16>, vector<64x128xbf16>, vector<32x128xf32> -> vector<32x128xf32>
    %8 = arith.truncf %7 : vector<32x128xf32> to vector<32x128xbf16>
    %cst_10 = arith.constant dense<0.000000e+00> : vector<32x128xf32>
    %9 = tpu.matmul %1, %8, %cst_10 {dimension_numbers = #tpu.dot_dimension_numbers<[1], [0], [0], [1], [0, 0, 1, 1], [], []>} : vector<32x32xbf16>, vector<32x128xbf16>, vector<32x128xf32> -> vector<32x128xf32>
    %10 = vector.extract_strided_slice %4 {offsets = [0, 0], sizes = [1, 128], strides = [1, 1]} : vector<8x128xf32> to vector<1x128xf32>
    %11 = vector.broadcast %10 : vector<1x128xf32> to vector<32x128xf32>
    %12 = arith.addf %9, %11 : vector<32x128xf32>
    %13 = math.tanh %12 : vector<32x128xf32>
    %14 = vector.extract_strided_slice %13 {offsets = [0, 0], sizes = [32, 64], strides = [1, 1]} : vector<32x128xf32> to vector<32x64xf32>
    %15 = arith.truncf %14 : vector<32x64xf32> to vector<32x64xbf16>
    %c1 = arith.constant 1 : index
    %c0_11 = arith.constant 0 : index
    %c0_12 = arith.constant 0 : index
    %16 = vector.load %arg4[%c1, %c0_11, %c0_12] : memref<4x64x128xbf16, #tpu.memory_space<vmem>>, vector<1x64x128xbf16>
    %17 = vector.shape_cast %16 : vector<1x64x128xbf16> to vector<64x128xbf16>
    %cst_13 = arith.constant dense<0.000000e+00> : vector<32x128xf32>
    %18 = tpu.matmul %15, %17, %cst_13 {dimension_numbers = #tpu.dot_dimension_numbers<[1], [0], [0], [1], [0, 0, 1, 1], [], []>} : vector<32x64xbf16>, vector<64x128xbf16>, vector<32x128xf32> -> vector<32x128xf32>
    %19 = arith.truncf %18 : vector<32x128xf32> to vector<32x128xbf16>
    %cst_14 = arith.constant dense<0.000000e+00> : vector<32x128xf32>
    %20 = tpu.matmul %1, %19, %cst_14 {dimension_numbers = #tpu.dot_dimension_numbers<[1], [0], [0], [1], [0, 0, 1, 1], [], []>} : vector<32x32xbf16>, vector<32x128xbf16>, vector<32x128xf32> -> vector<32x128xf32>
    %21 = vector.extract_strided_slice %4 {offsets = [1, 0], sizes = [1, 128], strides = [1, 1]} : vector<8x128xf32> to vector<1x128xf32>
    %22 = vector.broadcast %21 : vector<1x128xf32> to vector<32x128xf32>
    %23 = arith.addf %20, %22 : vector<32x128xf32>
    %24 = math.tanh %23 : vector<32x128xf32>
    %25 = vector.extract_strided_slice %24 {offsets = [0, 0], sizes = [32, 64], strides = [1, 1]} : vector<32x128xf32> to vector<32x64xf32>
    %26 = arith.truncf %25 : vector<32x64xf32> to vector<32x64xbf16>
    %c0_15 = arith.constant 0 : index
    %c0_16 = arith.constant 0 : index
    %c0_17 = arith.constant 0 : index
    %27 = vector.load %arg2[%c0_15, %c0_16, %c0_17] : memref<1x8x32xf32, #tpu.memory_space<vmem>>, vector<1x8x32xf32>
    %28 = vector.shape_cast %27 : vector<1x8x32xf32> to vector<8x32xf32>
    %29 = arith.truncf %28 : vector<8x32xf32> to vector<8x32xbf16>
    %cst_18 = arith.constant dense<0.000000e+00> : vector<8x64xf32>
    %30 = tpu.matmul %29, %26, %cst_18 {dimension_numbers = #tpu.dot_dimension_numbers<[1], [0], [0], [1], [0, 0, 1, 1], [], []>} : vector<8x32xbf16>, vector<32x64xbf16>, vector<8x64xf32> -> vector<8x64xf32>
    %31 = arith.truncf %30 : vector<8x64xf32> to vector<8x64xbf16>
    %c2 = arith.constant 2 : index
    %c0_19 = arith.constant 0 : index
    %c0_20 = arith.constant 0 : index
    %32 = vector.load %arg4[%c2, %c0_19, %c0_20] : memref<4x64x128xbf16, #tpu.memory_space<vmem>>, vector<1x64x128xbf16>
    %33 = vector.shape_cast %32 : vector<1x64x128xbf16> to vector<64x128xbf16>
    %cst_21 = arith.constant dense<0.000000e+00> : vector<8x128xf32>
    %34 = tpu.matmul %31, %33, %cst_21 {dimension_numbers = #tpu.dot_dimension_numbers<[1], [0], [0], [1], [0, 0, 1, 1], [], []>} : vector<8x64xbf16>, vector<64x128xbf16>, vector<8x128xf32> -> vector<8x128xf32>
    %35 = vector.extract_strided_slice %4 {offsets = [2, 0], sizes = [1, 128], strides = [1, 1]} : vector<8x128xf32> to vector<1x128xf32>
    %36 = vector.broadcast %35 : vector<1x128xf32> to vector<8x128xf32>
    %37 = arith.addf %34, %36 : vector<8x128xf32>
    %38 = math.tanh %37 : vector<8x128xf32>
    %39 = vector.extract_strided_slice %38 {offsets = [0, 0], sizes = [8, 64], strides = [1, 1]} : vector<8x128xf32> to vector<8x64xf32>
    %40 = arith.truncf %39 : vector<8x64xf32> to vector<8x64xbf16>
    %c3 = arith.constant 3 : index
    %c0_22 = arith.constant 0 : index
    %c0_23 = arith.constant 0 : index
    %41 = vector.load %arg4[%c3, %c0_22, %c0_23] : memref<4x64x128xbf16, #tpu.memory_space<vmem>>, vector<1x64x128xbf16>
    %42 = vector.shape_cast %41 : vector<1x64x128xbf16> to vector<64x128xbf16>
    %cst_24 = arith.constant dense<0.000000e+00> : vector<8x128xf32>
    %43 = tpu.matmul %40, %42, %cst_24 {dimension_numbers = #tpu.dot_dimension_numbers<[1], [0], [0], [1], [0, 0, 1, 1], [], []>} : vector<8x64xbf16>, vector<64x128xbf16>, vector<8x128xf32> -> vector<8x128xf32>
    %44 = vector.extract_strided_slice %4 {offsets = [3, 0], sizes = [1, 128], strides = [1, 1]} : vector<8x128xf32> to vector<1x128xf32>
    %45 = vector.broadcast %44 : vector<1x128xf32> to vector<8x128xf32>
    %46 = arith.addf %43, %45 : vector<8x128xf32>
    %cst_25 = arith.constant dense<0xFF800000> : vector<8xf32>
    %47 = vector.multi_reduction <maximumf>, %46, %cst_25 [1] : vector<8x128xf32> to vector<8xf32>
    %48 = vector.shape_cast %47 : vector<8xf32> to vector<8x1xf32>
    %49 = vector.broadcast %48 : vector<8x1xf32> to vector<8x128xf32>
    %50 = arith.subf %46, %49 : vector<8x128xf32>
    %51 = math.exp %50 : vector<8x128xf32>
    %cst_26 = arith.constant dense<0.000000e+00> : vector<8xf32>
    %52 = vector.multi_reduction <add>, %51, %cst_26 [1] : vector<8x128xf32> to vector<8xf32>
    %53 = vector.shape_cast %52 : vector<8xf32> to vector<8x1xf32>
    %54 = math.log %53 : vector<8x1xf32>
    %55 = vector.broadcast %48 : vector<8x1xf32> to vector<8x128xf32>
    %56 = arith.subf %46, %55 : vector<8x128xf32>
    %57 = vector.broadcast %54 : vector<8x1xf32> to vector<8x128xf32>
    %58 = arith.subf %56, %57 : vector<8x128xf32>
    %c0_27 = arith.constant 0 : index
    %c0_28 = arith.constant 0 : index
    %c0_29 = arith.constant 0 : index
    %59 = vector.load %arg6[%c0_27, %c0_28, %c0_29] : memref<1x8x128xf32, #tpu.memory_space<vmem>>, vector<1x8x128xf32>
    %60 = vector.shape_cast %59 : vector<1x8x128xf32> to vector<8x128xf32>
    %61 = vector.shape_cast %58 : vector<8x128xf32> to vector<1x8x128xf32>
    tpu.vector_store %arg6[%c0_27, %c0_28, %c0_29], %61 {strides = array<i32>} : memref<1x8x128xf32, #tpu.memory_space<vmem>>, vector<1x8x128xf32>,
    return
  }
  func.func @transform_0(%arg0: i32) -> (i32, i32, i32) {
    %c0_i32 = arith.constant 0 : i32
    %c0_i32_0 = arith.constant 0 : i32
    %c0_i32_1 = arith.constant 0 : i32
    return %arg0, %c0_i32, %c0_i32_0 : i32, i32, i32
  }
  func.func @transform_1(%arg0: i32) -> (i32, i32, i32) {
    %c0_i32 = arith.constant 0 : i32
    %c0_i32_0 = arith.constant 0 : i32
    %c0_i32_1 = arith.constant 0 : i32
    return %arg0, %c0_i32, %c0_i32_0 : i32, i32, i32
  }
  func.func @transform_2(%arg0: i32) -> (i32, i32, i32) {
    %c0_i32 = arith.constant 0 : i32
    %c0_i32_0 = arith.constant 0 : i32
    %c0_i32_1 = arith.constant 0 : i32
    return %arg0, %c0_i32, %c0_i32_0 : i32, i32, i32
  }
  func.func @transform_3(%arg0: i32) -> (i32, i32, i32) {
    %c0_i32 = arith.constant 0 : i32
    %c0_i32_0 = arith.constant 0 : i32
    %c0_i32_1 = arith.constant 0 : i32
    %c0_i32_2 = arith.constant 0 : i32
    return %c0_i32, %c0_i32_0, %c0_i32_1 : i32, i32, i32
  }
  func.func @transform_4(%arg0: i32) -> (i32, i32) {
    %c0_i32 = arith.constant 0 : i32
    %c0_i32_0 = arith.constant 0 : i32
    %c0_i32_1 = arith.constant 0 : i32
    return %c0_i32, %c0_i32_0 : i32, i32
  }
  func.func @transform_5(%arg0: i32) -> (i32, i32, i32) {
    %c0_i32 = arith.constant 0 : i32
    %c0_i32_0 = arith.constant 0 : i32
    %c0_i32_1 = arith.constant 0 : i32
    return %arg0, %c0_i32, %c0_i32_0 : i32, i32, i32
  }
}

</mosaic_0001>

<bundles_post_ra>
// kernel: tpu_custom_call.1
= control target key start
LH: loop header
LB: loop body
LE: loop exit
PB: predicated region body
PF: predicated region fallthrough
CT: control target
= control target key end

     0   :  { %s1865_s0 = inlined_call_operand.hbm [shape: bf16[2,32,32], index: 0, kind: input, shape index: {}]   ;;  %s1866_s1 = inlined_call_operand.hbm [shape: f32[2,8,32], index: 1, kind: input, shape index: {}]   ;;  %s1867_s2 = inlined_call_operand.hbm [shape: bf16[2,32,64], index: 2, kind: input, shape index: {}]   ;;  %s1868_s3 = inlined_call_operand.hbm [shape: bf16[4,64,128], index: 3, kind: input, shape index: {}]   ;;  %s1869_s4 = inlined_call_operand.hbm [shape: f32[8,128], index: 4, kind: input, shape index: {}]   ;;  %s1870_s5 = inlined_call_operand.hbm [shape: f32[2,8,128], index: 5, kind: output, shape index: {}]  }
   0x1   :  { %1883 = sst [smem:[#allocation18_spill]] %s1865_s0 }
   0x2   :  { %1884 = sst [smem:[#allocation19_spill]] %s1866_s1 }
   0x3   :  { %1885 = sst [smem:[#allocation20_spill]] %s1868_s3 }
   0x4   :  { %10 = vsyncpa [#allocation3], 0 }
   0x5   :  { %12 = vsyncpa [#allocation3 + $0x1], 0 }
   0x6   :  { %13 = vsyncpa [#allocation6], 0 }
   0x7   :  { %15 = vsyncpa [#allocation6 + $0x1], 0 }
   0x8   :  { %16 = vsyncpa [#allocation9], 0 }
   0x9   :  { %17 = vsyncpa [#allocation4], 0 }
   0xa   :  { %19 = vsyncpa [#allocation4 + $0x1], 0  ;;  %s1579_s18 = smov 0   ;;  %s1581_s19 = smov 0  }
   0xb   :  { %s1583_s20 = smov 0   ;;  %s1585_s21 = smov 0  }
   0xc LB: > { %1886 = sst [smem:[#allocation16_spill]] %s1533_s20  ;;  %s1600_s22 = sadd.s32 4294967295, %s1537_s21   ;;  %s1537_s21 = sphi %s1585_s21, %s1915_s21   ;;  %s1533_s20 = sphi %s1583_s20, %s1912_s20   ;;  %s1529_s19 = sphi %s1581_s19, %s1914_s19   ;;  %s1525_s18 = sphi %s1579_s18, %s1913_s18  }
   0xd   : > { %s1044_s23 = sadd.s32 4294967294, %s1537_s21   ;;  %p45_p0 = scmp.ne.s32.totalorder %s1529_s19, %s1525_s18 }
   0xe   : > { %p1875_p1 = scmp.eq.s32.totalorder %s1600_s22, 0  ;;  %p163_p2 = scmp.eq.s32.totalorder %s1600_s22, 1 }
   0xf   : > { %p169_p3 = scmp.eq.s32.totalorder %s1044_s23, 1  ;;  %p1045_p5 = scmp.ge.s32.totalorder %s1537_s21, 1 }
  0x10   : > { %p1609_p4 = por %p1875_p1, %p45_p0  ;;  %p176_p7 = scmp.lt.s32.totalorder %s1537_s21, 3 }
  0x11   : > { %p1614_p6 = por %p169_p3, %p45_p0  ;;  %s1539_s27 = smov [#allocation8]  }
  0x12   : > { %s1887_s24 = scalar_select %p1609_p4, 1, 0 }
  0x13   : > { %s1888_s25 = scalar_select %p1614_p6, 1, 0 }
  0x14   : > { %p1619_p8 = pnand %p1045_p5, %p176_p7  ;;  %s188_s28 = sshll.u32 %s1539_s27, 4  ;;  %s189_s28 = int_to_ptr.vmem [resolvable:$true] %s188_s28 }
  0x15   : > { %s1633_s30 = sadd.s32 1, %s1537_s21   ;;  %s32_s6 = sadd.s32 1, %s1533_s20 }
  0x16   : > { %s1889_s26 = scalar_select %p1619_p8, 1, 0 }
  0x17   : > { %p1222_p9 = pneg %p1619_p8  ;;  %s29_s7 = ssub.s32 %s1537_s21, %s1633_s30 }
  0x18   : > { %s1340_s8 = scalar_lea.vmem %s189_s28, 2048  ;;  %p1348_p5 = scmp.lt.s32.totalorder %s189_s28, %s189_s28 }
  0x19   : > { %p1628_p11 = pnand %p1222_p9, %p1875_p1  ;;  %p1341_p13 = scmp.ne.s32.totalorder %s189_s28, %s1340_s8 }
  0x1a   : > { %p1349_p7 = scmp.lt.s32.totalorder %s1340_s8, %s1340_s8 }
  0x1b   : > { %s1890_s29 = scalar_select %p1628_p11, 1, 0 }
  0x1c   : > { %p1876_p12 = pneg %p1628_p11  ;;  %p1350_p9 = por %p1349_p7, %p1348_p5 }
  0x1e   : > { %p1343_p0 = pnand %p1341_p13, %p1876_p12 }
  0x20   : > { %p1344_p3 = pneg %p1343_p0 }
  0x22   : > { %p1351_p10 = pnand %p1350_p9, %p1344_p3 }
  0x24   : > { %1354 = shalt.err (!%p1351_p10)
}
  0x25   : > { %s1871_s9 = smov 64   ;;  %s1873_s10 = smov 4  }
  0x26   : > { %s1891_s3 = sld [smem:[#allocation20_spill]]  ;;  %p30_p10 = scmp.eq.s32.totalorder %s29_s7, 0 }
  0x27   : > { %p39_p13 = scmp.ne.s32.totalorder %s1533_s20, %s1529_s19  ;;  %p40_p0 = scmp.eq.s32.totalorder %s1537_s21, 0 }
  0x28   : > { %p1245_p3 = scmp.lt.s32.totalorder %s1537_s21, 2  ;;  %s1665_s15 = sand.u32 1, %s1533_s20  }
  0x29   : > { %s1656_s13 = scalar_select %p30_p10, %s1533_s20, %s32_s6  }
  0x2a   : > { %p41_p5 = por %p40_p0, %p39_p13  ;;  %p1660_p7 = por %p163_p2, %p39_p13 }
  0x2b   : > { %1892 = sst [smem:[#allocation17_spill]] %s1656_s13  ;;  %s234_s16 = sand.u32 1, %s1537_s21  }
  0x2c   : > { %1225 = dma.hbm_to_vmem [thread:$0]  (!%p1628_p11), %s1891_s3, 2048, %s189_s28, [#allocation9], %s1871_s9, %s1871_s9, %s1873_s10  }
  0x2d   : > { %s1893_s14 = scalar_select %p1660_p7, 1, 0 }
  0x2e   : > { %p1669_p9 = pnand %p1245_p3, %p41_p5  ;;  %s1052_s27 = sshll.u32 %s1665_s15, 3 }
  0x2f   : > { %s1053_s28 = sshll.u32 %s1537_s21, 7  ;;  %s238_s6 = scalar_lea.vmem [#allocation5], %s1052_s27 }
  0x30   : > { %s245_s7 = sshll.u32 %s238_s6, 4  ;;  %s1895_s1 = sld [smem:[#allocation19_spill]]  ;;  %s246_s7 = int_to_ptr.vmem [resolvable:$true] %s245_s7 }
  0x31   : > { %s1678_s9 = scalar_lea.sflag [#allocation6], %s234_s16  ;;  %p1682_p10 = pneg %p1669_p9 }
  0x36   : > { %s243_s12 = scalar_lea.hbm %s1895_s1, %s1053_s28  ;;  %s1360_s3 = scalar_lea.hbm %s1895_s1, 256 }
  0x37   : > { %s1355_s10 = scalar_lea.hbm %s243_s12, 128  ;;  %p1361_p3 = scmp.lt.s32.totalorder %s243_s12, %s1895_s1 }
  0x38   : > { %p1356_p2 = scmp.ne.s32.totalorder %s243_s12, %s1355_s10  ;;  %p1362_p5 = scmp.lt.s32.totalorder %s1360_s3, %s1355_s10 }
  0x3a   : > { %p1358_p13 = pnand %p1682_p10, %p1356_p2  ;;  %p1363_p1 = por %p1362_p5, %p1361_p3 }
  0x3c   : > { %p1359_p0 = pneg %p1358_p13 }
  0x3e   : > { %p1364_p12 = pnand %p1363_p1, %p1359_p0 }
  0x40   : > { %1367 = shalt.err (!%p1364_p12)
}
  0x41   : > { %s1368_s16 = scalar_lea.vmem %s246_s7, 128  ;;  %s1542_s11 = smov [#allocation5]  }
  0x42   : > { %p1369_p6 = scmp.ne.s32.totalorder %s246_s7, %s1368_s16  ;;  %s1373_s13 = sshll.u32 %s1542_s11, 4  ;;  %s1374_s13 = int_to_ptr.vmem [resolvable:$false] %s1373_s13 }
  0x43   : > { %s1375_s20 = scalar_lea.vmem %s1374_s13, 256  ;;  %p1376_p2 = scmp.lt.s32.totalorder %s246_s7, %s1374_s13 }
  0x44   : > { %p1371_p7 = pnand %p1369_p6, %p1682_p10  ;;  %p1377_p13 = scmp.lt.s32.totalorder %s1375_s20, %s1368_s16 }
  0x46   : > { %p1372_p4 = pneg %p1371_p7  ;;  %p1378_p8 = por %p1377_p13, %p1376_p2 }
  0x48   : > { %p1379_p11 = pnand %p1378_p8, %p1372_p4 }
  0x4a   : > { %1382 = shalt.err (!%p1379_p11)
}
  0x4b   : > { %1235 = dma.hbm_to_vmem [thread:$0]  (!%p1669_p9), %s243_s12, 128, %s246_s7, %s1678_s9  }
  0x4c   : > { %s1897_s3 = sshll.u32 %s1665_s15, 4  ;;  %s1543_s6 = smov [#allocation10]  }
  0x4d   : > { %s256_s10 = scalar_lea.vmem [#allocation7], %s1897_s3  ;;  %s202_s8 = sshll.u32 %s1543_s6, 4  ;;  %s203_s8 = int_to_ptr.vmem [resolvable:$true] %s202_s8 }
  0x4e   : > { %s263_s27 = sshll.u32 %s256_s10, 4  ;;  %s1394_s28 = scalar_lea.vmem %s203_s8, 128  ;;  %s1701_s27 = int_to_ptr.vmem [resolvable:$true] %s263_s27 }
  0x4f   : > { %p1395_p1 = scmp.ne.s32.totalorder %s203_s8, %s1394_s28  ;;  %p1898_p6 = scmp.ne.s32.totalorder %s1890_s29, 0 }
  0x50   : > { %p1402_p11 = scmp.lt.s32.totalorder %s203_s8, %s203_s8  ;;  %p1403_p7 = scmp.lt.s32.totalorder %s1394_s28, %s1394_s28 }
  0x51   : > { %p1899_p12 = pneg %p1898_p6 }
  0x52   : > { %p1404_p0 = por %p1403_p7, %p1402_p11 }
  0x53   : > { %p1397_p4 = pnand %p1395_p1, %p1899_p12 }
  0x55   : > { %p1398_p8 = pneg %p1397_p4 }
  0x57   : > { %p1405_p3 = pnand %p1404_p0, %p1398_p8 }
  0x59   : > { %1408 = shalt.err (!%p1405_p3)
}
  0x5a   : > { %1228 = dma.hbm_to_vmem [thread:$0]  (!%p1898_p6), %s1869_s4, 128, %s203_s8, [#allocation9]  }
  0x5b   : > { %s1099_s7 = sshll.u32 %s1537_s21, 8  ;;  %s1900_s12 = smov %s1897_s3 }
  0x5c   : > { %s217_s16 = scalar_lea.vmem [#allocation2], %s1900_s12  ;;  %s1901_s0 = sld [smem:[#allocation18_spill]] }
  0x5d   : > { %s224_s11 = sshll.u32 %s217_s16, 4  ;;  %s214_s29 = scalar_lea.sflag [#allocation3], %s1665_s15  ;;  %s1721_s11 = int_to_ptr.vmem [resolvable:$true] %s224_s11 }
  0x62   : > { %s1719_s6 = scalar_lea.hbm %s1901_s0, %s1099_s7  ;;  %s1414_s13 = scalar_lea.hbm %s1901_s0, 512 }
  0x63   : > { %s1409_s28 = scalar_lea.hbm %s1719_s6, 256  ;;  %p1415_p1 = scmp.lt.s32.totalorder %s1719_s6, %s1901_s0 }
  0x64   : > { %p1410_p5 = scmp.ne.s32.totalorder %s1719_s6, %s1409_s28  ;;  %p1416_p6 = scmp.lt.s32.totalorder %s1414_s13, %s1409_s28 }
  0x66   : > { %p1412_p2 = pnand %p1410_p5, %p1682_p10  ;;  %p1417_p12 = por %p1416_p6, %p1415_p1 }
  0x68   : > { %p1413_p13 = pneg %p1412_p2 }
  0x6a   : > { %p1418_p4 = pnand %p1417_p12, %p1413_p13 }
  0x6c   : > { %1421 = shalt.err (!%p1418_p4)
}
  0x6d   : > { %s1422_s15 = scalar_lea.vmem %s1721_s11, 256  ;;  %s1544_s3 = smov [#allocation2]  }
  0x6e   : > { %p1423_p8 = scmp.ne.s32.totalorder %s1721_s11, %s1422_s15  ;;  %s1427_s10 = sshll.u32 %s1544_s3, 4  ;;  %s1428_s10 = int_to_ptr.vmem [resolvable:$false] %s1427_s10 }
  0x6f   : > { %s1429_s8 = scalar_lea.vmem %s1428_s10, 512  ;;  %p1430_p0 = scmp.lt.s32.totalorder %s1721_s11, %s1428_s10 }
  0x70   : > { %p1425_p11 = pnand %p1423_p8, %p1682_p10  ;;  %p1431_p3 = scmp.lt.s32.totalorder %s1429_s8, %s1422_s15 }
  0x72   : > { %p1426_p7 = pneg %p1425_p11  ;;  %p1432_p5 = por %p1431_p3, %p1430_p0 }
  0x74   : > { %p1433_p2 = pnand %p1432_p5, %p1426_p7 }
  0x76   : > { %1436 = shalt.err (!%p1433_p2)
}
  0x77   : > { %s1902_s28 = smov 4   ;;  %s1903_s20 = smov 64  }
  0x78   : > { %1232 = dma.hbm_to_vmem [thread:$0]  (!%p1669_p9), %s1719_s6, 256, %s1721_s11, %s214_s29, %s1903_s20, %s1903_s20, %s1902_s28  }
  0x79   : > { %s262_s16 = scalar_lea.hbm %s1867_s2, %s1099_s7  ;;  %s1442_s8 = scalar_lea.hbm %s1867_s2, 512 }
  0x7a   : > { %s1437_s3 = scalar_lea.hbm %s262_s16, 256  ;;  %p1443_p12 = scmp.lt.s32.totalorder %s262_s16, %s1867_s2 }
  0x7b   : > { %p1438_p13 = scmp.ne.s32.totalorder %s262_s16, %s1437_s3  ;;  %p1444_p4 = scmp.lt.s32.totalorder %s1442_s8, %s1437_s3 }
  0x7d   : > { %p1440_p1 = pnand %p1438_p13, %p1682_p10  ;;  %p1445_p8 = por %p1444_p4, %p1443_p12 }
  0x7f   : > { %p1441_p6 = pneg %p1440_p1 }
  0x81   : > { %p1446_p11 = pnand %p1445_p8, %p1441_p6 }
  0x83   : > { %1449 = shalt.err (!%p1446_p11)
}
  0x84   : > { %s1450_s7 = scalar_lea.vmem %s1701_s27, 256  ;;  %s1545_s11 = smov [#allocation7]  }
  0x85   : > { %p1451_p7 = scmp.ne.s32.totalorder %s1701_s27, %s1450_s7  ;;  %s1455_s6 = sshll.u32 %s1545_s11, 4  ;;  %s1456_s6 = int_to_ptr.vmem [resolvable:$false] %s1455_s6 }
  0x86   : > { %s1457_s29 = scalar_lea.vmem %s1456_s6, 512  ;;  %p1458_p5 = scmp.lt.s32.totalorder %s1701_s27, %s1456_s6 }
  0x87   : > { %p1453_p0 = pnand %p1451_p7, %p1682_p10  ;;  %p1459_p2 = scmp.lt.s32.totalorder %s1457_s29, %s1450_s7 }
  0x89   : > { %p1454_p3 = pneg %p1453_p0  ;;  %p1460_p13 = por %p1459_p2, %p1458_p5 }
  0x8b   : > { %p1461_p1 = pnand %p1460_p13, %p1454_p3 }
  0x8d   : > { %1464 = shalt.err (!%p1461_p1)
}
  0x8e   : > { %1238 = dma.hbm_to_vmem [thread:$0]  (!%p1669_p9), %s262_s16, 256, %s1701_s27, %s1678_s9, %s1903_s20, %s1903_s20, %s1902_s28  }
  0x8f   : > { %p1904_p10 = scmp.ne.s32.totalorder %s1889_s26, 0 }
  0x90   : > { %s1775_s0 = sand.u32 (!%p1904_p10), 1, %s1529_s19   ;;  %p1905_p6 = scmp.ne.s32.totalorder (!%p1904_p10), %s1887_s24, 0 }
  0x91   : > { %275 = sbr.rel (%p1904_p10) target bundleno = 1954 (0x7a2), region = 40  ;;  %s1058_s1 = sshll.u32 (!%p1904_p10), %s1775_s0, 4 }
  0x92   : > { %s278_s17 = scalar_lea.sflag (!%p1904_p10), [#allocation3], %s1775_s0  ;;  %s1779_s13 = scalar_lea.vmem (!%p1904_p10), [#allocation2], %s1058_s1 }
  0x96   : > { %1508 = dma.done.wait (%p1905_p6), %s278_s17, 256  }
  0x97   : > { %1510 = vsyncadd (%p1905_p6), %s278_s17, 4294967040  ;;  %s286_s26 = sand.u32 1, %s1600_s22   ;;  %s1059_s9 = sshll.u32 %s1775_s0, 3 }
  0x98   : > { %s287_s23 = scalar_lea.sflag [#allocation6], %s286_s26  ;;  %s1789_s27 = scalar_lea.vmem [#allocation5], %s1059_s9 }
  0x99   : > { %1512 = dma.done.wait (%p1905_p6), %s287_s23, 384  }
  0x9a   : > { %1514 = vsyncadd (%p1905_p6), %s287_s23, 4294966912  ;;  %s299_s28 = scalar_lea.vmem [#allocation7], %s1058_s1  ;;  %p1906_p9 = scmp.eq.s32.totalorder %s1600_s22, 0 }
  0x9c   : > { %1516 = dma.done.wait (%p1906_p9), [#allocation9], 2176   ;;  %p1907_p12 = pmov %p1906_p9 }
  0x9d   : > { %v1287_v0 = vld [vmem:[#allocation8 + $0x18] sm:$0xff]   ;;  %v1288_v1 = vld [vmem:[#allocation8 + $0x10] sm:$0xff]   ;;  %v1289_v2 = vld [vmem:[#allocation8 + $0x8] sm:$0xff]   ;;  %vm396_vm0 = vcmask 523264   ;;  %vm468_vm1 = vcmask 261120   ;;  %v454_v18 = vlaneseq  ;;  %v1546_v43 = vmov 0.0  }
  0x9e   : > { %1518 = vsyncadd (%p1907_p12), [#allocation9], 4294965120  ;;  %1134 = vmatprep.subr.bf16.mxu0 %v1287_v0  ;;  %v1291_v3 = vld [vmem:[%s299_s28] sm:$0xff]   ;;  %v1292_v5 = vld [vmem:[%s299_s28 + $0x8] sm:$0xff]   ;;  %vm1547_vm2 = vmmov 0   ;;  %s1096_s24 = sshll.u32 %s1600_s22, 7 }
  0x9f   : > { %1135 = vmatpush3.bf16.msra.mxu0 %v1287_v0  ;;  %v1290_v4 = vld [vmem:[#allocation8] sm:$0xff]   ;;  %1142 = vmatprep.mubr.msk.bf16.mxu0 %vm396_vm0, %v1291_v3  ;;  %v1294_v13 = vld [vmem:[%s1779_s13 + $0x8] sm:$0xff]   ;;  %v1296_v15 = vld [vmem:[#allocation8 + $0x30] sm:$0xff]   ;;  %v1806_v19 = vshrl.u32 %v454_v18, 7  ;;  %s343_s20 = scalar_lea.vmem [#allocation11], %s1059_s9  ;;  %s910_s15 = scalar_lea.hbm %s1870_s5, %s1096_s24 }
  0xa0   : > { %1136 = vmatprep.subr.bf16.mxu0 %v1288_v1  ;;  %v1293_v6 = vld [vmem:[%s1779_s13] sm:$0xff]   ;;  %v1295_v14 = vld [vmem:[#allocation8 + $0x38] sm:$0xff]   ;;  %v1297_v16 = vld [vmem:[#allocation8 + $0x28] sm:$0xff]   ;;  %s912_s12 = sshll.u32 %s343_s20, 4  ;;  %s899_s10 = scalar_lea.sflag [#allocation4], %s1775_s0  ;;  %s913_s12 = int_to_ptr.vmem [resolvable:$true] %s912_s12 }
  0xa1   : > { %1150 = vmatprep.mubr.msk.bf16.mxu1 %vm468_vm1, %v1293_v6  ;;  %v1298_v17 = vld [vmem:[#allocation8 + $0x20] sm:$0xff]   ;;  %v456_v20 = vsub.s32 0, %v1806_v19  ;;  %v1299_v44 = vld [vmem:[#allocation8 + $0x58] sm:$0xff]   ;;  %v1300_v45 = vld [vmem:[#allocation8 + $0x50] sm:$0xff]   ;;  %v622_v47 = vsub.s32 1, %v1806_v19  ;;  %s1465_s8 = scalar_lea.vmem %s913_s12, 128 }
  0xa2   : > { %v1809_v21 = vld [vmem:[#allocation10] sm:$0xff]  ;;  %v1301_v46 = vld [vmem:[#allocation8 + $0x48] sm:$0xff]   ;;  %v679_v61 = vld [vmem:[%s1789_s27] sm:$0xff]  ;;  %p1466_p4 = scmp.ne.s32.totalorder %s913_s12, %s1465_s8  ;;  %p1908_p8 = scmp.ne.s32.totalorder %s1893_s14, 0 }
  0xa3   : > { %1137 = vmatpush3.bf16.msra.mxu0 %v1288_v1  ;;  %v457_v23 = vrot.slane %v1809_v21, %v456_v20  ;;  %v623_v48 = vrot.slane %v1809_v21, %v622_v47  ;;  %v680_v0 = vpack.c.bf16 %v679_v61, %v679_v61  ;;  %v1302_v1 = vld [vmem:[#allocation8 + $0x40] sm:$0xff]   ;;  %s1548_s7 = smov [#allocation11]  }
  0xa4   : > { %1138 = vmatprep.subr.bf16.mxu0 %v1289_v2  ;;  %p1467_p11 = pnand %p1466_p4, %p1908_p8  ;;  %s1469_s11 = sshll.u32 %s1548_s7, 4  ;;  %s1470_s11 = int_to_ptr.vmem [resolvable:$false] %s1469_s11 }
  0xa5   : > { %s1471_s22 = scalar_lea.vmem %s1470_s11, 256  ;;  %p1472_p0 = scmp.lt.s32.totalorder %s913_s12, %s1470_s11 }
  0xa6   : > { %p1468_p7 = pneg %p1467_p11  ;;  %p1473_p3 = scmp.lt.s32.totalorder %s1471_s22, %s1465_s8 }
  0xa7   : > { %1139 = vmatpush3.bf16.msra.mxu0 %v1289_v2 }
  0xa8   : > { %1140 = vmatprep.subr.bf16.mxu0 %v1290_v4  ;;  %p1474_p5 = por %p1473_p3, %p1472_p0 }
  0xaa   : > { %p1475_p2 = pnand %p1474_p5, %p1468_p7 }
  0xab   : > { %1141 = vmatpush3.bf16.msra.mxu0 %v1290_v4 }
  0xae   : > { %1143 = vmatmul.mubr.msk.bf16.vlgmr.msra.gmra.mxu0 %vm396_vm0, %v1292_v5 }
  0xaf   : > { %1170 = vmatprep.mubr.msk.bf16.mxu0 %vm468_vm1, %v1293_v6 }
 0x16e   : > { %v1144_v7 = vpop.f32.mrf.mxu0 }
 0x170   : > { %v437_v8 = vpop.f32.mrf.mxu0 }
 0x172   : > { %v1145_v9 = vpop.f32.mrf.mxu0 }
 0x173   : > { %v453_v10 = vpack.c.bf16 %v1145_v9, %v1144_v7  ;;  %v1303_v7 = vld [vmem:[#allocation8 + $0x78] sm:$0xff]   ;;  %v1305_v9 = vld [vmem:[#allocation8 + $0x68] sm:$0xff]  }
 0x174   : > { %v440_v11 = vpop.f32.mrf.mxu0 }
 0x175   : > { %v452_v12 = vpack.c.bf16 %v440_v11, %v437_v8  ;;  %1146 = vmatprep.subr.bf16.mxu1 %v453_v10  ;;  %v1304_v8 = vld [vmem:[#allocation8 + $0x70] sm:$0xff]   ;;  %v736_v11 = vsub.s32 2, %v1806_v19 }
 0x176   : > { %1147 = vmatpush3.bf16.msra.mxu1 %v453_v10  ;;  %v1306_v10 = vld [vmem:[#allocation8 + $0x60] sm:$0xff]  }
 0x177   : > { %1148 = vmatprep.subr.bf16.mxu1 %v452_v12 }
 0x17a   : > { %1149 = vmatpush3.bf16.msra.mxu1 %v452_v12  ;;  %v737_v12 = vrot.slane %v1809_v21, %v736_v11 }
 0x17b   : > { %1154 = vmatprep.subr.bf16.mxu1 %v1295_v14 }
 0x17d   : > { %1151 = vmatmul.mubr.msk.bf16.vlgmr.msra.gmra.mxu1 %vm468_vm1, %v1294_v13 }
 0x17e   : > { %1155 = vmatpush3.bf16.msra.mxu1 %v1295_v14 }
 0x17f   : > { %1156 = vmatprep.subr.bf16.mxu1 %v1296_v15 }
 0x182   : > { %1157 = vmatpush3.bf16.msra.mxu1 %v1296_v15 }
 0x183   : > { %1158 = vmatprep.subr.bf16.mxu1 %v1297_v16 }
 0x186   : > { %1159 = vmatpush3.bf16.msra.mxu1 %v1297_v16 }
 0x187   : > { %1160 = vmatprep.subr.bf16.mxu1 %v1298_v17 }
 0x18a   : > { %1161 = vmatpush3.bf16.msra.mxu1 %v1298_v17 }
 0x18b   : > { %1182 = vmatprep.subr.bf16.mxu1 %v1546_v43 }
 0x23d   : > { %v1152_v22 = vpop.f32.mrf.mxu1 }
 0x23e   : > { %v518_v28 = vadd.f32 %v1152_v22, %v457_v23  ;;  %v818_v22 = vsub.s32 3, %v1806_v19 }
 0x23f   : > { %v509_v24 = vpop.f32.mrf.mxu1 }
 0x240   : > { %v510_v25 = vadd.f32 %v509_v24, %v457_v23 }
 0x241   : > { %v1153_v26 = vpop.f32.mrf.mxu1 }
 0x242   : > { %v521_v27 = vadd.f32 %v1153_v26, %v457_v23  ;;  %1307 = vtanh.f32 %v510_v25 }
 0x243   : > { %v512_v29 = vpop.f32.mrf.mxu1 }
 0x244   : > { %v513_v30 = vadd.f32 %v512_v29, %v457_v23  ;;  %1309 = vtanh.f32 %v521_v27  ;;  %v819_v23 = vrot.slane %v1809_v21, %v818_v22 }
 0x246   : > { %1311 = vtanh.f32 %v513_v30 }
 0x247   : > { %1313 = vtanh.f32 %v518_v28 }
 0x24f   : > { %v1308_v31 = vpop.eup %1307 }
 0x251   : > { %v1310_v32 = vpop.eup %1309 }
 0x253   : > { %v1312_v33 = vpop.eup %1311 }
 0x254   : > { %v1314_v34 = vpop.eup %1313  ;;  %v528_v35 = vpack.c.bf16 %v1312_v33, %v1308_v31 }
 0x255   : > { %v529_v36 = vpack.c.bf16 %v1310_v32, %v1314_v34 }
 0x256   : > { %1162 = vmatprep.mubr.msk.bf16.mxu1 %vm396_vm0, %v528_v35 }
 0x257   : > { %1163 = vmatmul.mubr.msk.bf16.vlgmr.msra.gmra.mxu1 %vm396_vm0, %v529_v36 }
 0x258   : > { %1190 = vmatprep.mubr.msk.bf16.mxu1 %vm1547_vm2, %v1546_v43  ;;  %1183 = vmatpush3.bf16.msra.mxu1 %v1299_v44 }
 0x259   : > { %1184 = vmatprep.subr.bf16.mxu1 %v1546_v43 }
 0x25c   : > { %1185 = vmatpush3.bf16.msra.mxu1 %v1300_v45 }
 0x25d   : > { %1186 = vmatprep.subr.bf16.mxu1 %v1546_v43 }
 0x260   : > { %1187 = vmatpush3.bf16.msra.mxu1 %v1301_v46 }
 0x261   : > { %1188 = vmatprep.subr.bf16.mxu1 %v1546_v43 }
 0x264   : > { %1189 = vmatpush3.bf16.msra.mxu1 %v1302_v1 }
 0x317   : > { %v1164_v37 = vpop.f32.mrf.mxu1 }
 0x319   : > { %v603_v38 = vpop.f32.mrf.mxu1 }
 0x31b   : > { %v1165_v39 = vpop.f32.mrf.mxu1 }
 0x31c   : > { %v619_v40 = vpack.c.bf16 %v1165_v39, %v1164_v37 }
 0x31d   : > { %v606_v41 = vpop.f32.mrf.mxu1 }
 0x31e   : > { %v618_v42 = vpack.c.bf16 %v606_v41, %v603_v38  ;;  %1166 = vmatprep.subr.bf16.mxu0 %v619_v40 }
 0x31f   : > { %1167 = vmatpush3.bf16.msra.mxu0 %v619_v40 }
 0x320   : > { %1168 = vmatprep.subr.bf16.mxu0 %v618_v42 }
 0x323   : > { %1169 = vmatpush3.bf16.msra.mxu0 %v618_v42 }
 0x324   : > { %1174 = vmatprep.subr.bf16.mxu0 %v1546_v43 }
 0x326   : > { %1171 = vmatmul.mubr.msk.bf16.vlgmr.msra.gmra.mxu0 %vm468_vm1, %v1294_v13 }
 0x327   : > { %1178 = vmatprep.mubr.msk.bf16.mxu0 %vm1547_vm2, %v1546_v43 }
 0x3e6   : > { %v1172_v49 = vpop.f32.mrf.mxu0 }
 0x3e7   : > { %v667_v50 = vadd.f32 %v1172_v49, %v623_v48 }
 0x3e8   : > { %v658_v51 = vpop.f32.mrf.mxu0 }
 0x3e9   : > { %1315 = vtanh.f32 %v667_v50  ;;  %v659_v55 = vadd.f32 %v658_v51, %v623_v48 }
 0x3ea   : > { %v1173_v52 = vpop.f32.mrf.mxu0 }
 0x3eb   : > { %v670_v53 = vadd.f32 %v1173_v52, %v623_v48 }
 0x3ec   : > { %v661_v54 = vpop.f32.mrf.mxu0 }
 0x3ed   : > { %1317 = vtanh.f32 %v670_v53  ;;  %v662_v56 = vadd.f32 %v661_v54, %v623_v48 }
 0x3ef   : > { %1319 = vtanh.f32 %v662_v56 }
 0x3f0   : > { %1321 = vtanh.f32 %v659_v55 }
 0x3f6   : > { %v1316_v57 = vpop.eup %1315 }
 0x3fa   : > { %v1318_v58 = vpop.eup %1317 }
 0x3fb   : > { %v678_v59 = vpack.c.bf16 %v1318_v58, %v1316_v57 }
 0x3fc   : > { %v1320_v60 = vpop.eup %1319 }
 0x3fd   : > { %1175 = vmatpush3.bf16.msra.mxu0 %v678_v59  ;;  %v1322_v62 = vpop.eup %1321 }
 0x3fe   : > { %1176 = vmatprep.subr.bf16.mxu0 %v1546_v43  ;;  %v677_v63 = vpack.c.bf16 %v1320_v60, %v1322_v62 }
 0x401   : > { %1177 = vmatpush3.bf16.msra.mxu0 %v677_v63 }
 0x402   : > { %1194 = vmatprep.subr.bf16.mxu0 %v1546_v43 }
 0x404   : > { %1179 = vmatmul.mubr.msk.bf16.vlgmr.msra.gmra.mxu0 %vm468_vm1, %v680_v0 }
 0x405   : > { %1202 = vmatprep.mubr.msk.bf16.mxu0 %vm1547_vm2, %v1546_v43  ;;  %1195 = vmatpush3.bf16.msra.mxu0 %v1303_v7 }
 0x406   : > { %1196 = vmatprep.subr.bf16.mxu0 %v1546_v43 }
 0x409   : > { %1197 = vmatpush3.bf16.msra.mxu0 %v1304_v8 }
 0x40a   : > { %1198 = vmatprep.subr.bf16.mxu0 %v1546_v43 }
 0x40d   : > { %1199 = vmatpush3.bf16.msra.mxu0 %v1305_v9 }
 0x40e   : > { %1200 = vmatprep.subr.bf16.mxu0 %v1546_v43 }
 0x411   : > { %1201 = vmatpush3.bf16.msra.mxu0 %v1306_v10 }
 0x4c4   : > { %v718_v2 = vpop.f32.mrf.mxu0 }
 0x4c5   : > { %v724_v3 = vpack.c.bf16 %v718_v2, %v718_v2 }
 0x4c6   : > { %v1180_v4 = vpop.f32.mrf.mxu0 }
 0x4c7   : > { %1191 = vmatmul.mubr.msk.bf16.vlgmr.msra.gmra.mxu1 %vm396_vm0, %v724_v3 }
 0x4c8   : > { %v721_v5 = vpop.f32.mrf.mxu0 }
 0x4ca   : > { %v1181_v6 = vpop.f32.mrf.mxu0 }
 0x587   : > { %v799_v13 = vpop.f32.mrf.mxu1 }
 0x588   : > { %v800_v14 = vadd.f32 %v799_v13, %v737_v12 }
 0x589   : > { %v1192_v15 = vpop.f32.mrf.mxu1 }
 0x58a   : > { %1323 = vtanh.f32 %v800_v14 }
 0x58b   : > { %v802_v16 = vpop.f32.mrf.mxu1 }
 0x58d   : > { %v1193_v17 = vpop.f32.mrf.mxu1 }
 0x597   : > { %v1324_v18 = vpop.eup %1323 }
 0x598   : > { %v806_v20 = vpack.c.bf16 %v1324_v18, %v1324_v18 }
 0x59a   : > { %1203 = vmatmul.mubr.msk.bf16.vlgmr.msra.gmra.mxu0 %vm396_vm0, %v806_v20 }
 0x65a   : > { %v881_v24 = vpop.f32.mrf.mxu0 }
 0x65b   : > { %v882_v25 = vadd.f32 %v881_v24, %v819_v23 }
 0x65c   : > { %v1204_v26 = vpop.f32.mrf.mxu0 }
 0x65d   : > { %887 = vmax.xlane.f32.xlu0 %v882_v25 }
 0x65e   : > { %v884_v27 = vpop.f32.mrf.mxu0 }
 0x660   : > { %v1205_v28 = vpop.f32.mrf.mxu0 }
 0x6e6   : > { %v888_v29 = vpop.xlane.xlu0 %887 }
 0x6e7   : > { %v889_v30 = vsub.f32 %v882_v25, %v888_v29 }
 0x6e9   : > { %v890_v31 = vmul.f32 1.442695, %v889_v30 }
 0x6eb   : > { %1325 = vpow2.f32 %v890_v31 }
 0x6f8   : > { %v1326_v32 = vpop.eup %1325 }
 0x6f9   : > { %892 = vadd.xlane.f32.xlu0 %v1326_v32 }
 0x782   : > { %v893_v33 = vpop.xlane.xlu0 %892 }
 0x783   : > { %1327 = vlog2.f32 %v893_v33 }
 0x790   : > { %v1328_v19 = vpop.eup %1327 }
 0x791   : > { %v895_v21 = vmul.f32 0.6931472, %v1328_v19 }
 0x793   : > { %v896_v34 = vsub.f32 %v889_v30, %v895_v21 }
 0x795   : > { %897 = vst [vmem:[%s343_s20] sm:$0xff] %v896_v34 }
 0x796   : > { %1478 = shalt.err (!%p1475_p2)
}
 0x797   : > { %s1479_s6 = scalar_lea.hbm %s910_s15, 128  ;;  %s1483_s1 = scalar_lea.hbm %s1870_s5, 256 }
 0x798   : > { %p1480_p13 = scmp.ne.s32.totalorder %s910_s15, %s1479_s6  ;;  %p1484_p6 = scmp.lt.s32.totalorder %s910_s15, %s1870_s5 }
 0x799   : > { %p1485_p9 = scmp.lt.s32.totalorder %s1483_s1, %s1479_s6 }
 0x79a   : > { %p1481_p1 = pnand %p1480_p13, %p1908_p8 }
 0x79b   : > { %p1486_p12 = por %p1485_p9, %p1484_p6 }
 0x79c   : > { %p1482_p10 = pneg %p1481_p1 }
 0x79e   : > { %p1487_p4 = pnand %p1486_p12, %p1482_p10 }
 0x7a0   : > { %1490 = shalt.err (!%p1487_p4)
}
 0x7a1   : > { %1220 = dma.vmem_to_hbm [thread:$0]  (%p1908_p8), %s913_s12, 128, %s910_s15, %s899_s10  }
 0x7a2 PF: > { %s924_s26 = sand.u32 1, %s1525_s18   ;;  %p1909_p11 = scmp.ne.s32.totalorder %s1888_s25, 0 }
 0x7a3   : > { %p1910_p7 = scmp.ge.s32.totalorder %s1537_s21, 2  ;;  %s925_s9 = scalar_lea.sflag [#allocation4], %s924_s26 }
 0x7a5   : > { %p1240_p0 = pnand %p1910_p7, %p1909_p11 }
 0x7a7   : > { %p1241_p3 = pneg %p1240_p0 }
 0x7a9   : > { %1520 = dma.done.wait (%p1241_p3), %s925_s9, 128  }
 0x7aa   : > { %1522 = vsyncadd (%p1241_p3), %s925_s9, 4294967168  ;;  %s1911_s23 = sld [smem:[#allocation16_spill]]  ;;  %p22_p5 = scmp.ge.s32.totalorder %s1633_s30, 4  }
 0x7ab   : > { %s1912_s20 = sld [smem:[#allocation17_spill]]  ;;  %s1913_s18 = smov %s1529_s19 }
 0x7ac   : > { %s1915_s21 = smov %s1633_s30  ;;  %24 = sbr.rel (!%p22_p5) target bundleno = 12 (0xc), region = 120 }
 0x7b0   : > { %s1914_s19 = smov %s1911_s23 }
 0x7b1   :  { %930 = vsyncpa [#allocation3], 1 }
 0x7b2   :  { %932 = vsyncpa [#allocation3 + $0x1], 1 }
 0x7b3   :  { %933 = vsyncpa [#allocation6], 1 }
 0x7b4   :  { %935 = vsyncpa [#allocation6 + $0x1], 1 }
 0x7b5   :  { %936 = vsyncpa [#allocation9], 1 }
 0x7b6   :  { %937 = vsyncpa [#allocation4], 1 }
 0x7b7   :  { %939 = vsyncpa [#allocation4 + $0x1], 1 }

</bundles_post_ra>
